<compile_context>
chip_gen: v7x
topology: tpu7x:2x2x1
jax: 0.10.0
libtpu: 0.0.40
codegen_flags: <defaults>
</compile_context>

<pallas_src>
import functools
import math

import jax
import jax.numpy as jnp
from jax.experimental import pallas as pl
from jax.experimental.pallas import tpu as pltpu


_TARGET_BLOCK_BYTES = 4 * 1024 * 1024      # ~4 MiB f32 per block (perf review)
_VMEM_LIMIT_BYTES = 40 * 1024 * 1024       # > v5e's 16 MiB default, < v7x's 64 MiB


def _round_up(a, b):
    return (a + b - 1) // b * b


def _pick_lanes(total):
    """Largest lane-dense width L (multiple of 128) dividing `total`, preferring
    widths that still leave at least 8 rows (full sublanes)."""
    for want_rows in (8, 1):
        for L in (2048, 1024, 512, 256, 128):
            if total % L == 0 and total // L >= want_rows:
                return L
    return None


def _row_tile(rows, row_bytes):
    """Row-tile size targeting ~_TARGET_BLOCK_BYTES per block.

    If the whole array fits in one block, the block equals the full row extent
    (allowed even when not a multiple of 8); otherwise the tile is a multiple
    of 8 and the ragged final tile is handled by the bounded partial-block DMA.
    """
    max_rows = max(8, (_TARGET_BLOCK_BYTES // max(row_bytes, 1)) // 8 * 8)
    return rows if rows <= max_rows else max_rows


# ---------------------------------------------------------------------------
# Kernels
# ---------------------------------------------------------------------------
def _absmax_partial_kernel(x_ref, o_ref, *, rows, block_rows):
    """Per-tensor pass 1: per-tile partial absmax of |x|.

    The grid axis is 'parallel' (each tile owns its own aligned (8, 128) output
    block, no carried accumulator), so on v7x both TensorCores split the
    reduction; the tiny partial result is max-reduced by XLA in the wrapper.
    k is NOT applied here: max|x*k| == |k|*max|x| bit-exactly, so |k| is folded
    into delta in the wrapper instead (saves one VPU mul per element).
    """
    a = jnp.abs(x_ref[...].astype(jnp.float32))
    if rows % block_rows:
        # Ragged final row tile: out-of-range rows of the block hold
        # unspecified data (the HBM DMA is bounded), so mask them to 0,
        # the identity for absmax.
        rid = jax.lax.broadcasted_iota(jnp.int32, a.shape, 0)
        a = jnp.where(rid + pl.program_id(0) * block_rows < rows, a, 0.0)
    tile_max = jnp.max(a, axis=(0, 1), keepdims=True)            # (1, 1)
    o_ref[...] = jnp.broadcast_to(tile_max, o_ref.shape)


def _quant_kernel(s_ref, x_ref, o_ref, *, qmin, qmax):
    """Per-tensor pass 2: elementwise fake-quant.  s_ref = [k, delta] in SMEM.

    Ragged final row tiles need no masking: the out-of-bounds rows of the
    output block are dropped by the bounded writeback DMA.
    """
    k = s_ref[0]
    delta = s_ref[1]
    y = x_ref[...].astype(jnp.float32) * k
    # NOTE(perf review): exact divide kept (vs. one fused multiply by k/delta)
    # so rounding ties match the fp32 torch reference bit-for-bit; the pass is
    # HBM-bound and the divide occupies otherwise-idle EUP slots.
    q = jnp.clip(jnp.round(y / delta), qmin, qmax)
    o_ref[...] = (q * delta).astype(o_ref.dtype)


def _vsquant_kernel(s_ref, x_ref, o_ref, delta_ref, *, qmin, qmax, V):
    """Per-group (size V along the feature dim) fake-quant on a lane-dense
    (TR, K) block.  s_ref = [k, |k|] in SMEM; delta_ref is a dense f32 scratch.

    Phase 1 walks the G static lane windows of the VMEM block, computes each
    group's absmax (|k| folded in) and broadcasts the per-group delta into the
    dense scratch.  Phase 2 quantizes the whole block on dense vregs and does
    ONE full-width store, so HBM DMAs, VMEM buffers and the heavy per-element
    math are all lane-dense even when V < 128.  The ragged last group
    (K % V != 0) is handled by the `min(K, ...)` window bound - no HBM padding.
    # TODO(synk): replace phase 1 with an in-kernel (TR, G, V) reshape + one
    # vectorized axis=-1 reduction once Mosaic reliably lowers minor-dim splits.
    """
    k = s_ref[0]
    absk = s_ref[1]
    rows_blk, K = x_ref.shape
    n_groups = -(-K // V)

    for g in range(n_groups):
        lo = g * V
        hi = min(K, lo + V)
        xg = x_ref[:, lo:hi].astype(jnp.float32)
        am = jnp.max(jnp.abs(xg), axis=-1, keepdims=True) * absk        # (TR, 1)
        d = jnp.maximum((2.0 * am) / (qmax - qmin), 1e-5)               # (TR, 1)
        delta_ref[:, lo:hi] = jnp.broadcast_to(d, (rows_blk, hi - lo))

    y = x_ref[...].astype(jnp.float32) * k
    delta = delta_ref[...]
    q = jnp.clip(jnp.round(y / delta), qmin, qmax)
    o_ref[...] = (q * delta).astype(o_ref.dtype)


# ---------------------------------------------------------------------------
# Wrappers
# ---------------------------------------------------------------------------
def _aquant_2d(x2, k, qmin, qmax):
    """Two-pass per-tensor fake-quant of a lane-dense (rows, L) view."""
    rows, L = x2.shape
    TR = _row_tile(rows, L * 4)
    n_tiles = pl.cdiv(rows, TR)

    # Pass 1: per-tile partial absmax ('parallel' -> both TCs on v7x megacore).
    partial = pl.pallas_call(
        functools.partial(_absmax_partial_kernel, rows=rows, block_rows=TR),
        out_shape=jax.ShapeDtypeStruct((n_tiles * 8, 128), jnp.float32),
        grid=(n_tiles,),
        in_specs=[pl.BlockSpec((TR, L), lambda i: (i, 0))],
        out_specs=pl.BlockSpec((8, 128), lambda i: (i, 0)),
        compiler_params=pltpu.CompilerParams(
            dimension_semantics=("parallel",),
            vmem_limit_bytes=_VMEM_LIMIT_BYTES),
    )(x2)

    # Tiny scalar epilogue in XLA; |k| folded into delta (max|x*k| == |k|*max|x|).
    absmax_y = jnp.max(partial) * abs(k)
    delta = jnp.maximum(2.0 * absmax_y / (qmax - qmin), 1e-5).astype(jnp.float32)
    scalars = jnp.stack([jnp.asarray(k, jnp.float32), delta])            # [k, delta]

    # Pass 2: tiled, double-buffered elementwise quantize ('parallel' grid).
    # (Pass fusion into a single call with a phase axis was considered but kept
    # separate so the quantize pass keeps its 'parallel' tag on v7x.)
    return pl.pallas_call(
        functools.partial(_quant_kernel, qmin=qmin, qmax=qmax),
        out_shape=jax.ShapeDtypeStruct((rows, L), x2.dtype),
        grid=(n_tiles,),
        in_specs=[
            pl.BlockSpec(memory_space=pltpu.SMEM),               # [k, delta]
            pl.BlockSpec((TR, L), lambda i: (i, 0)),             # lane-dense tile
        ],
        out_specs=pl.BlockSpec((TR, L), lambda i: (i, 0)),
        compiler_params=pltpu.CompilerParams(
            dimension_semantics=("parallel",),
            vmem_limit_bytes=_VMEM_LIMIT_BYTES),
    )(scalars, x2)


def aquant_pallas(x, k, n_bits):
    """A_quant(x * k, n_bits) with range_max=None, m=0 (per-tensor symmetric)."""
    qmax = float(2 ** (n_bits - 1) - 1)
    qmin = float(-(2 ** (n_bits - 1)) + 1)
    total = int(x.size)
    if total == 0:
        return x

    flat = x.reshape(-1)                                         # free (metadata)
    if total % 128 == 0:
        # Lane-dense, pad-free view: L is a 128-multiple divisor of total, so
        # the reshape is free and no crop is needed afterwards.
        L = _pick_lanes(total)
        out = _aquant_2d(flat.reshape(total // L, L), k, qmin, qmax)
        return out.reshape(x.shape)

    # TODO(synk): element counts that are not a multiple of 128 (rare for NN
    # activations) still take one pad+crop HBM round trip; an in-kernel tail
    # mask over a flat 1-D layout would remove it.
    total_p = _round_up(total, 128)
    flat_p = jnp.pad(flat, (0, total_p - total))                 # zeros: absmax-neutral
    L = _pick_lanes(total_p)
    out = _aquant_2d(flat_p.reshape(total_p // L, L), k, qmin, qmax)
    return out.reshape(-1)[:total].reshape(x.shape)


def vsquant_pallas(x, k, n_bits, V):
    """A_VSQuant(x * k, n_bits, V, trans=False) for 2-D x = [rows, K]."""
    assert x.ndim == 2, "VSQuant (trans=False) expects [rows, K]"
    qmax = float(2 ** (n_bits - 1) - 1)
    qmin = float(-(2 ** (n_bits - 1)) + 1)
    rows, K = x.shape
    TR = _row_tile(rows, K * 4)                                  # ~4 MiB blocks
    n_tiles = pl.cdiv(rows, TR)                                  # ragged tail OK:
    # per-group scales depend only on their own row, and out-of-bounds rows of
    # the final output block are dropped by the bounded writeback DMA.
    scalars = jnp.asarray([k, abs(k)], dtype=jnp.float32)        # [k, |k|]

    return pl.pallas_call(
        functools.partial(_vsquant_kernel, qmin=qmin, qmax=qmax, V=V),
        out_shape=jax.ShapeDtypeStruct((rows, K), x.dtype),
        grid=(n_tiles,),
        in_specs=[
            pl.BlockSpec(memory_space=pltpu.SMEM),               # [k, |k|]
            pl.BlockSpec((TR, K), lambda i: (i, 0)),             # lane-dense block
        ],
        out_specs=pl.BlockSpec((TR, K), lambda i: (i, 0)),
        scratch_shapes=[pltpu.VMEM((TR, K), jnp.float32)],       # dense delta
        compiler_params=pltpu.CompilerParams(
            dimension_semantics=("parallel",),
            vmem_limit_bytes=_VMEM_LIMIT_BYTES),
    )(scalars, x)


# ---------------------------------------------------------------------------
# STE module (JAX port of the torch nn.Module forward)
# ---------------------------------------------------------------------------
class STE:
    def __init__(self, trans=False):
        self.n_bits = None   # int bit-width (int path implemented in-kernel)
        self.k = None        # optional scalar pre-scale (torch.mul(x, k))
        self.V = None        # group size for VSQuant
        self.trans = trans
        self.m = 0

    def __call__(self, x):
        has_k = self.k is not None
        k = float(self.k) if has_k else 1.0

        if self.n_bits is None:
            return x * k if has_k else x

        if isinstance(self.n_bits, str):
            if self.n_bits == "fp32":
                return x * k if has_k else x
            if self.n_bits == "fp16":
                y = x * k if has_k else x
                return y.astype(jnp.float16).astype(x.dtype)
            # TODO(synk): 'fp8' mode (frexp/ldexp mantissa clip) not implemented
            # as a Pallas kernel.
            raise NotImplementedError("fp8 quant mode not implemented")

        if self.m > 0:
            # TODO(synk): dual-scale (m>0) branch requires the range_max hook.
            raise NotImplementedError("m>0 quant mode not implemented")

        if self.V is not None:
            if self.trans:
                # TODO(synk): trans=True groups along dim -2; not implemented.
                raise NotImplementedError("trans=True VSQuant not implemented")
            return vsquant_pallas(x, k, self.n_bits, self.V)

        # TODO(synk): outputmaxminhook (range_max) branch not implemented;
        # falls through to the global-absmax path.
        return aquant_pallas(x, k, self.n_bits)


# ---------------------------------------------------------------------------
# Pure-JAX references for verification
# ---------------------------------------------------------------------------
def _ref_aquant(x, k, n_bits):
    qmax, qmin = 2 ** (n_bits - 1) - 1, -(2 ** (n_bits - 1)) + 1
    y = x * k
    am = jnp.max(jnp.abs(y))
    delta = jnp.maximum(2.0 * am / (qmax - qmin), 1e-5)
    return jnp.clip(jnp.round(y / delta), qmin, qmax) * delta


def _ref_vsquant(x, k, n_bits, V):
    qmax, qmin = 2 ** (n_bits - 1) - 1, -(2 ** (n_bits - 1)) + 1
    y = x * k
    K = y.shape[-1]
    out = []
    for g in range(math.ceil(K / V)):
        yt = y[:, g * V:(g + 1) * V]
        am = jnp.max(jnp.abs(yt), axis=-1, keepdims=True)
        delta = jnp.maximum(2.0 * am / (qmax - qmin), 1e-5)
        out.append(jnp.clip(jnp.round(yt / delta), qmin, qmax) * delta)
    return jnp.concatenate(out, axis=-1)


if __name__ == "__main__":
    key = jax.random.PRNGKey(0)
    k1, k2, k3, k4 = jax.random.split(key, 4)

    # --- path 1: k * x followed by per-tensor 8-bit A_quant (NCHW-style input) ---
    x = jax.random.normal(k1, (2, 4, 16, 16), dtype=jnp.float32)
    ste = STE()
    ste.n_bits = 8
    ste.k = 0.5
    y = jax.block_until_ready(ste(x))
    assert y.shape == x.shape and y.dtype == x.dtype
    assert jnp.allclose(y, _ref_aquant(x, 0.5, 8), atol=1e-5), "A_quant mismatch"

    # --- path 2: per-group (V=16) 8-bit A_VSQuant on [rows, K] activations ---
    x2 = jax.random.normal(k2, (8, 32), dtype=jnp.float32)
    ste_v = STE(trans=False)
    ste_v.n_bits = 8
    ste_v.V = 16
    y2 = jax.block_until_ready(ste_v(x2))
    assert y2.shape == x2.shape
    assert jnp.allclose(y2, _ref_vsquant(x2, 1.0, 8, 16), atol=1e-5), "VSQuant mismatch"

    # --- path 2b: ragged last group (K % V != 0), handled fully in-kernel ---
    x3 = jax.random.normal(k3, (8, 40), dtype=jnp.float32)
    y3 = jax.block_until_ready(vsquant_pallas(x3, 1.0, 8, 16))
    assert jnp.allclose(y3, _ref_vsquant(x3, 1.0, 8, 16), atol=1e-5), "ragged VSQuant mismatch"

    # --- path 1b: non-128-multiple element count (padded fallback path) ---
    x4 = jax.random.normal(k4, (3, 5, 7), dtype=jnp.float32)
    ste4 = STE()
    ste4.n_bits = 8
    y4 = jax.block_until_ready(ste4(x4))
    assert y4.shape == x4.shape
    assert jnp.allclose(y4, _ref_aquant(x4, 1.0, 8), atol=1e-5), "A_quant (ragged) mismatch"

    print("KERNEL_OK")
</pallas_src>

<mosaic_0001>
module attributes {stable_mosaic.version = 11 : i64} {
  func.func @_absmax_partial_kernel(%arg0: i32, %arg1: memref<8x256xf32, #tpu.memory_space<vmem>>, %arg2: memref<8x128xf32, #tpu.memory_space<vmem>>) attributes {dimension_semantics = [#tpu.dimension_semantics<parallel>], iteration_bounds = array<i64: 1>, scalar_prefetch = 0 : i64, scratch_operands = 0 : i64, tpu.core_type = #tpu.core_type<tc>, window_params = [{transform_indices = @transform_0, window_bounds = array<i64: 8, 256>}, {transform_indices = @transform_1, window_bounds = array<i64: 8, 128>}]} {
    %c0 = arith.constant 0 : index
    %c0_0 = arith.constant 0 : index
    %0 = vector.load %arg1[%c0, %c0_0] : memref<8x256xf32, #tpu.memory_space<vmem>>, vector<8x256xf32>
    %1 = math.absf %0 : vector<8x256xf32>
    %2 = vector.shape_cast %1 : vector<8x256xf32> to vector<1x8x256xf32>
    %cst = arith.constant dense<0xFF800000> : vector<1xf32>
    %3 = vector.multi_reduction <maximumf>, %2, %cst [1, 2] : vector<1x8x256xf32> to vector<1xf32>
    %4 = vector.shape_cast %3 : vector<1xf32> to vector<1x1x1xf32>
    %5 = vector.extract %4[0, 0, 0] : f32 from vector<1x1x1xf32>
    %6 = vector.broadcast %5 : f32 to vector<1x1xf32>
    %7 = vector.shape_cast %6 : vector<1x1xf32> to vector<1x1xf32>
    %8 = vector.broadcast %7 : vector<1x1xf32> to vector<8x128xf32>
    %c0_1 = arith.constant 0 : index
    %c0_2 = arith.constant 0 : index
    %9 = vector.load %arg2[%c0_1, %c0_2] : memref<8x128xf32, #tpu.memory_space<vmem>>, vector<8x128xf32>
    tpu.vector_store %arg2[%c0_1, %c0_2], %8 {strides = array<i32>} : memref<8x128xf32, #tpu.memory_space<vmem>>, vector<8x128xf32>,
    return
  }
  func.func @transform_0(%arg0: i32) -> (i32, i32) {
    %c0_i32 = arith.constant 0 : i32
    %c0_i32_0 = arith.constant 0 : i32
    return %arg0, %c0_i32 : i32, i32
  }
  func.func @transform_1(%arg0: i32) -> (i32, i32) {
    %c0_i32 = arith.constant 0 : i32
    %c0_i32_0 = arith.constant 0 : i32
    return %arg0, %c0_i32 : i32, i32
  }
}

</mosaic_0001>

<bundles_post_ra>
// kernel: tpu_custom_call.1
= control target key start
LH: loop header
LB: loop body
LE: loop exit
PB: predicated region body
PF: predicated region fallthrough
CT: control target
= control target key end

     0   :  { %6 = vsyncpa [#allocation3], 0  ;;  %s140_s0 = inlined_call_operand.hbm [shape: f32[8,256], index: 0, kind: input, shape index: {}]   ;;  %s141_s1 = inlined_call_operand.hbm [shape: f32[8,128], index: 1, kind: output, shape index: {}]  }
   0x1   :  { %7 = vsyncpa [#allocation4], 0  ;;  %s104_s6 = smov [#allocation2]   ;;  %s56_s10 = scalar_lea.hbm %s140_s0, 256 }
   0x2   :  { %s14_s7 = sshll.u32 %s104_s6, 4  ;;  %p57_p0 = scmp.ne.s32.totalorder %s140_s0, %s56_s10  ;;  %s15_s7 = int_to_ptr.vmem [resolvable:$true] %s14_s7 }
   0x3   :  { %p60_p1 = scmp.lt.u32.totalorder %s56_s10, %s140_s0 }
   0x5   :  { %p62_p2 = pnand %p60_p1, %p57_p0 }
   0x7   :  { %65 = shalt.err (!%p62_p2)
}
   0x8   :  { %s66_s15 = scalar_lea.vmem %s15_s7, 256  ;;  %p71_p4 = scmp.lt.s32.totalorder %s15_s7, %s15_s7 }
   0x9   :  { %p67_p3 = scmp.ne.s32.totalorder %s15_s7, %s66_s15  ;;  %p72_p5 = scmp.lt.s32.totalorder %s66_s15, %s66_s15 }
   0xb   :  { %p73_p6 = por %p72_p5, %p71_p4 }
   0xd   :  { %p74_p7 = pnand %p73_p6, %p67_p3 }
   0xf   :  { %77 = shalt.err (!%p74_p7)
}
  0x10   :  { %17 = dma.hbm_to_vmem [thread:$0]  %s140_s0, 256, %s15_s7, [#allocation3]  }
  0x11   :  { %100 = dma.done.wait [#allocation3], 256  }
  0x12   :  { %101 = vsyncadd [#allocation3], 4294967040  ;;  %v21_v0 = vld [vmem:[#allocation2] sm:$0xff]  ;;  %v22_v1 = vld [vmem:[#allocation2 + $0x8] sm:$0xff]  ;;  %s105_s18 = smov [#allocation5]  }
  0x13   :  { %v23_v2 = vand.u32 2147483647, %v21_v0  ;;  %v24_v3 = vand.u32 2147483647, %v22_v1  ;;  %s43_s19 = sshll.u32 %s105_s18, 4  ;;  %s44_s19 = int_to_ptr.vmem [resolvable:$true] %s43_s19 }
  0x14   :  { %s78_s0 = scalar_lea.vmem %s44_s19, 128  ;;  %p83_p9 = scmp.lt.s32.totalorder %s44_s19, %s44_s19 }
  0x15   :  { %v25_v4 = vmax.f32.f32 %v23_v2, %v24_v3  ;;  %p79_p8 = scmp.ne.s32.totalorder %s44_s19, %s78_s0  ;;  %p84_p10 = scmp.lt.s32.totalorder %s78_s0, %s78_s0 }
  0x17   :  { %26 = vmax.xlane.f32.xlu0 %v25_v4  ;;  %p85_p11 = por %p84_p10, %p83_p9 }
  0x19   :  { %p86_p12 = pnand %p85_p11, %p79_p8 }
  0xa4   :  { %v27_v5 = vpop.xlane.xlu0 %26 }
  0xa5   :  { %v28_v6 = vrot.slane %v27_v5, 4 }
  0xa7   :  { %v29_v7 = vmax.f32 %v27_v5, %v28_v6 }
  0xa9   :  { %v30_v8 = vrot.slane %v29_v7, 2 }
  0xab   :  { %v31_v9 = vmax.f32 %v29_v7, %v30_v8 }
  0xad   :  { %v32_v10 = vrot.slane %v31_v9, 1 }
  0xaf   :  { %v33_v11 = vmax.f32 %v31_v9, %v32_v10 }
  0xb1   :  { %52 = vpush %v33_v11 }
  0xe2   :  { %s53_s20 = spop %52 }
  0xe3   :  { %v35_v12 = vstv %s53_s20 }
  0xe4   :  { %36 = vst [vmem:[#allocation5] sm:$0xff] %v35_v12 }
  0xe5   :  { %89 = shalt.err (!%p86_p12)
}
  0xe6   :  { %s90_s23 = scalar_lea.hbm %s141_s1, 128 }
  0xe7   :  { %p91_p13 = scmp.ne.s32.totalorder %s141_s1, %s90_s23  ;;  %p94_p0 = scmp.lt.u32.totalorder %s90_s23, %s141_s1 }
  0xe9   :  { %p96_p1 = pnand %p94_p0, %p91_p13 }
  0xeb   :  { %99 = shalt.err (!%p96_p1)
}
  0xec   :  { %46 = dma.vmem_to_hbm [thread:$0]  %s44_s19, 128, %s141_s1, [#allocation4]  }
  0xed   :  { %102 = dma.done.wait [#allocation4], 128  }
  0xee   :  { %103 = vsyncadd [#allocation4], 4294967168 }
  0xef   :  { %50 = vsyncpa [#allocation3], 1 }
  0xf0   :  { %51 = vsyncpa [#allocation4], 1 }

</bundles_post_ra>
